<compile_context>
chip_gen: v7x
topology: tpu7x:2x2x1
jax: 0.10.0
libtpu: 0.0.40
codegen_flags: <defaults>
</compile_context>

<pallas_src>
import functools

import jax
import jax.numpy as jnp
import numpy as np
from jax import lax
from jax.experimental import pallas as pl
from jax.experimental.pallas import tpu as pltpu


def _fused_bottleneck_kernel(x_ref, s1_ref, b1_ref, w1_ref, b2_ref, w2_ref, masks_ref,
                             o_ref, *, Nb, H, W, Cin, Cinter, Cout, d):
    """Fused bn1+relu -> 1x1 conv -> bn2+relu -> dilated 3x3 conv -> channel concat.

    Per grid step (Nb images), channel-major layout (channels on sublanes,
    flattened H*W on lanes):
      x_ref:     (Nb, Cin, H*W)        f32   raw input
      s1, b1:    (Cin, 1)              f32   bn1 folded scale / bias
      w1_ref:    (Cinter, Cin)         bf16  conv1 weight with bn2 scale folded in
      b2_ref:    (Cinter, 1)           f32   bn2 folded bias
      w2_ref:    (9*Cout, Cinter)      bf16  conv2 taps stacked on M (t = kh*3+kw)
      masks_ref: (9, H*W)              f32   0/1 spatial validity mask per tap
      o_ref:     (Nb, Cin+Cout, H*W)   f32   output = [x | conv2_out] on channels
    """
    HW = H * W
    # Static lane offsets of the 9 dilated taps in the flattened (H, W) index.
    offs = [((kh - 1) * d) * W + (kw - 1) * d for kh in range(3) for kw in range(3)]

    s1 = s1_ref[...]
    b1 = b1_ref[...]
    b2 = b2_ref[...]
    w1 = w1_ref[...]
    w2 = w2_ref[...]
    masks = masks_ref[...]                                         # (9, HW) f32

    for b in range(Nb):                                            # unrolled
        xb = x_ref[b]                                              # (Cin, HW) f32
        # Passthrough channels stored immediately (no concat, short x live range).
        o_ref[b, :Cin, :] = xb

        # bn1 + relu (f32 VPU), then 1x1 conv on the MXU (bf16 operands, f32 acc).
        xa = jnp.maximum(xb * s1 + b1, 0.0)
        h = jnp.dot(w1, xa.astype(jnp.bfloat16),
                    preferred_element_type=jnp.float32)            # (Cinter, HW)
        # bn2 scale already folded into w1; add bias + relu, bf16 for the next dot.
        h = jnp.maximum(h + b2, 0.0).astype(jnp.bfloat16)

        # Dilated 3x3 conv: one fat dot produces all 9 tap partials stacked on M.
        p_all = jnp.dot(w2, h, preferred_element_type=jnp.float32)  # (9*Cout, HW)

        # Center tap (t=4): zero offset, always valid.
        acc = p_all[4 * Cout:5 * Cout]                              # (Cout, HW)
        for t, off in enumerate(offs):
            if t == 4:
                continue
            pt = p_all[t * Cout:(t + 1) * Cout]                     # aligned view
            shifted = pltpu.roll(pt, shift=(-off) % HW, axis=1)     # XLU lane roll
            acc = acc + shifted * masks[t:t + 1, :]                 # boundary mask

        o_ref[b, Cin:Cin + Cout, :] = acc


def _pick_images_per_step(n, per_image_bytes, vmem_budget_bytes):
    """Largest divisor of n whose double-buffered block fits the budget while
    leaving >= 2 grid steps (so both TensorCores get work on megacore parts)."""
    max_nb = max(1, vmem_budget_bytes // max(1, 2 * per_image_bytes))
    nb = 1
    for cand in range(1, n + 1):
        if n % cand != 0 or cand > max_nb:
            continue
        if n >= 2 and n // cand < 2:
            continue
        nb = cand
    return nb


def bottleneck_block_forward(x_nchw, p, visual=1, eps=1e-5):
    N, Cin, H, W = x_nchw.shape
    Cinter = p["conv1_w"].shape[0]
    Cout = p["conv2_w"].shape[0]
    d = int(visual)
    HW = H * W

    # Channel-major flattened layout: metadata-only reshape, NO transposes.
    x = x_nchw.reshape(N, Cin, HW).astype(jnp.float32)

    # Eval-mode BN folding.
    s1 = p["gamma1"] / jnp.sqrt(p["var1"] + eps)
    b1 = p["beta1"] - p["mean1"] * s1
    s2 = p["gamma2"] / jnp.sqrt(p["var2"] + eps)
    b2 = p["beta2"] - p["mean2"] * s2

    # Fold bn2's scale into conv1's output channels:  s2*(W1 @ xa)+b2 == (s2*W1)@xa + b2
    w1_eff = (p["conv1_w"][:, :, 0, 0] * s2[:, None]).astype(jnp.bfloat16)  # (Cinter, Cin)
    # conv2 weights: (Cout, Cinter, 3, 3) -> (kh, kw, Cout, Cinter) -> taps stacked on M.
    w2_stack = jnp.transpose(p["conv2_w"], (2, 3, 0, 1)).reshape(
        9 * Cout, Cinter).astype(jnp.bfloat16)                              # (9*Cout, Cinter)

    # Precomputed 0/1 boundary masks per tap (compile-time constants, tiny).
    yy, xx = np.meshgrid(np.arange(H), np.arange(W), indexing="ij")
    masks_np = np.zeros((9, HW), np.float32)
    t = 0
    for kh in range(3):
        for kw in range(3):
            dy, dx = (kh - 1) * d, (kw - 1) * d
            valid = ((yy + dy >= 0) & (yy + dy < H) & (xx + dx >= 0) & (xx + dx < W))
            masks_np[t] = valid.reshape(-1).astype(np.float32)
            t += 1
    tap_masks = jnp.asarray(masks_np)

    # ---- generation-aware VMEM budgeting (v7x: 64 MiB/TC, v5e/v6e: 128 MiB) ----
    try:
        vmem_cap = int(pltpu.get_tpu_info().vmem_capacity_bytes)
    except Exception:
        vmem_cap = 64 * 1024 * 1024
    per_image_bytes = (Cin + (Cin + Cout)) * HW * 4
    Nb = _pick_images_per_step(N, per_image_bytes, vmem_budget_bytes=vmem_cap // 2)

    weight_bytes = (Cinter * Cin + 9 * Cout * Cinter) * 2 + (2 * Cin + Cinter) * 4 + 9 * HW * 4
    block_bytes = 2 * Nb * per_image_bytes + 2 * weight_bytes        # double-buffer once
    vmem_limit = int(min(int(0.75 * vmem_cap), max(32 * 1024 * 1024, 4 * block_bytes)))

    flops = int(2 * N * HW * Cin * Cinter + 2 * N * HW * 9 * Cinter * Cout)
    bytes_accessed = int(N * HW * Cin * 4 + N * HW * (Cin + Cout) * 4 + weight_bytes)

    kernel = functools.partial(_fused_bottleneck_kernel, Nb=Nb, H=H, W=W,
                               Cin=Cin, Cinter=Cinter, Cout=Cout, d=d)

    out = pl.pallas_call(
        kernel,
        out_shape=jax.ShapeDtypeStruct((N, Cin + Cout, HW), jnp.float32),
        grid_spec=pltpu.PrefetchScalarGridSpec(
            num_scalar_prefetch=0,
            grid=(N // Nb,),
            in_specs=[
                pl.BlockSpec((Nb, Cin, HW), lambda n: (n, 0, 0)),
                pl.BlockSpec((Cin, 1), lambda n: (0, 0)),
                pl.BlockSpec((Cin, 1), lambda n: (0, 0)),
                pl.BlockSpec((Cinter, Cin), lambda n: (0, 0)),
                pl.BlockSpec((Cinter, 1), lambda n: (0, 0)),
                pl.BlockSpec((9 * Cout, Cinter), lambda n: (0, 0)),
                pl.BlockSpec((9, HW), lambda n: (0, 0)),
            ],
            out_specs=pl.BlockSpec((Nb, Cin + Cout, HW), lambda n: (n, 0, 0)),
        ),
        compiler_params=pltpu.CompilerParams(
            dimension_semantics=("parallel",),
            vmem_limit_bytes=vmem_limit,
        ),
        cost_estimate=pl.CostEstimate(flops=flops, transcendentals=0,
                                      bytes_accessed=bytes_accessed),
    )(x,
      s1.reshape(Cin, 1).astype(jnp.float32),
      b1.reshape(Cin, 1).astype(jnp.float32),
      w1_eff,
      b2.reshape(Cinter, 1).astype(jnp.float32),
      w2_stack,
      tap_masks)

    return out.reshape(N, Cin + Cout, H, W)


def _reference(x, p, visual=1, eps=1e-5):
    """Pure-JAX (f32, lax conv) reference for the correctness check (NCHW)."""
    s1 = p["gamma1"] / jnp.sqrt(p["var1"] + eps)
    b1 = p["beta1"] - p["mean1"] * s1
    s2 = p["gamma2"] / jnp.sqrt(p["var2"] + eps)
    b2 = p["beta2"] - p["mean2"] * s2
    h1 = jnp.maximum(x * s1[None, :, None, None] + b1[None, :, None, None], 0.0)
    c1 = lax.conv_general_dilated(h1, p["conv1_w"], (1, 1), "VALID",
                                  dimension_numbers=("NCHW", "OIHW", "NCHW"))
    h2 = jnp.maximum(c1 * s2[None, :, None, None] + b2[None, :, None, None], 0.0)
    c2 = lax.conv_general_dilated(h2, p["conv2_w"], (1, 1),
                                  [(visual, visual), (visual, visual)],
                                  rhs_dilation=(visual, visual),
                                  dimension_numbers=("NCHW", "OIHW", "NCHW"))
    return jnp.concatenate([x, c2], axis=1)


if __name__ == "__main__":
    key = jax.random.PRNGKey(0)
    N, Cin, H, W = 2, 4, 16, 16
    Cout = 8
    Cinter = 4 * Cout
    visual = 1

    ks = jax.random.split(key, 11)
    x = jax.random.normal(ks[0], (N, Cin, H, W), jnp.float32)
    p = dict(
        gamma1=1.0 + 0.1 * jax.random.normal(ks[1], (Cin,), jnp.float32),
        beta1=0.1 * jax.random.normal(ks[2], (Cin,), jnp.float32),
        mean1=0.1 * jax.random.normal(ks[3], (Cin,), jnp.float32),
        var1=jax.random.uniform(ks[4], (Cin,), jnp.float32, 0.5, 1.5),
        conv1_w=0.1 * jax.random.normal(ks[5], (Cinter, Cin, 1, 1), jnp.float32),
        gamma2=1.0 + 0.1 * jax.random.normal(ks[6], (Cinter,), jnp.float32),
        beta2=0.1 * jax.random.normal(ks[7], (Cinter,), jnp.float32),
        mean2=0.1 * jax.random.normal(ks[8], (Cinter,), jnp.float32),
        var2=jax.random.uniform(ks[9], (Cinter,), jnp.float32, 0.5, 1.5),
        conv2_w=0.1 * jax.random.normal(ks[10], (Cout, Cinter, 3, 3), jnp.float32),
    )

    out = jax.block_until_ready(bottleneck_block_forward(x, p, visual=visual))
    assert out.shape == (N, Cin + Cout, H, W), out.shape

    ref = jax.block_until_ready(_reference(x, p, visual=visual))
    # bf16 MXU operands (f32 accumulation) => looser tolerance than a pure-f32 path.
    np.testing.assert_allclose(np.asarray(out), np.asarray(ref), rtol=2e-2, atol=2e-2)
    print("KERNEL_OK")
</pallas_src>

<mosaic_0001>
module attributes {stable_mosaic.version = 11 : i64} {
  func.func @_fused_bottleneck_kernel(%arg0: i32, %arg1: memref<1x4x256xf32, #tpu.memory_space<vmem>>, %arg2: memref<4x1xf32, #tpu.memory_space<vmem>>, %arg3: memref<4x1xf32, #tpu.memory_space<vmem>>, %arg4: memref<32x4xbf16, #tpu.memory_space<vmem>>, %arg5: memref<32x1xf32, #tpu.memory_space<vmem>>, %arg6: memref<72x32xbf16, #tpu.memory_space<vmem>>, %arg7: memref<9x256xf32, #tpu.memory_space<vmem>>, %arg8: memref<1x12x256xf32, #tpu.memory_space<vmem>>) attributes {dimension_semantics = [#tpu.dimension_semantics<parallel>], iteration_bounds = array<i64: 2>, scalar_prefetch = 0 : i64, scratch_operands = 0 : i64, tpu.core_type = #tpu.core_type<tc>, window_params = [{transform_indices = @transform_0, window_bounds = array<i64: 1, 4, 256>}, {pipeline_mode = #tpu.pipeline_mode<synchronous>, transform_indices = @transform_1, window_bounds = array<i64: 4, 1>}, {pipeline_mode = #tpu.pipeline_mode<synchronous>, transform_indices = @transform_2, window_bounds = array<i64: 4, 1>}, {pipeline_mode = #tpu.pipeline_mode<synchronous>, transform_indices = @transform_3, window_bounds = array<i64: 32, 4>}, {pipeline_mode = #tpu.pipeline_mode<synchronous>, transform_indices = @transform_4, window_bounds = array<i64: 32, 1>}, {pipeline_mode = #tpu.pipeline_mode<synchronous>, transform_indices = @transform_5, window_bounds = array<i64: 72, 32>}, {pipeline_mode = #tpu.pipeline_mode<synchronous>, transform_indices = @transform_6, window_bounds = array<i64: 9, 256>}, {transform_indices = @transform_7, window_bounds = array<i64: 1, 12, 256>}]} {
    %c0 = arith.constant 0 : index
    %c0_0 = arith.constant 0 : index
    %0 = vector.load %arg2[%c0, %c0_0] : memref<4x1xf32, #tpu.memory_space<vmem>>, vector<4x1xf32>
    %c0_1 = arith.constant 0 : index
    %c0_2 = arith.constant 0 : index
    %1 = vector.load %arg3[%c0_1, %c0_2] : memref<4x1xf32, #tpu.memory_space<vmem>>, vector<4x1xf32>
    %c0_3 = arith.constant 0 : index
    %c0_4 = arith.constant 0 : index
    %2 = vector.load %arg5[%c0_3, %c0_4] : memref<32x1xf32, #tpu.memory_space<vmem>>, vector<32x1xf32>
    %c0_5 = arith.constant 0 : index
    %c0_6 = arith.constant 0 : index
    %3 = vector.load %arg4[%c0_5, %c0_6] : memref<32x4xbf16, #tpu.memory_space<vmem>>, vector<32x4xbf16>
    %c0_7 = arith.constant 0 : index
    %c0_8 = arith.constant 0 : index
    %4 = vector.load %arg6[%c0_7, %c0_8] : memref<72x32xbf16, #tpu.memory_space<vmem>>, vector<72x32xbf16>
    %c0_9 = arith.constant 0 : index
    %c0_10 = arith.constant 0 : index
    %5 = vector.load %arg7[%c0_9, %c0_10] : memref<9x256xf32, #tpu.memory_space<vmem>>, vector<9x256xf32>
    %c0_11 = arith.constant 0 : index
    %c0_12 = arith.constant 0 : index
    %c0_13 = arith.constant 0 : index
    %6 = vector.load %arg1[%c0_11, %c0_12, %c0_13] : memref<1x4x256xf32, #tpu.memory_space<vmem>>, vector<1x4x256xf32>
    %7 = vector.shape_cast %6 : vector<1x4x256xf32> to vector<4x256xf32>
    %c0_14 = arith.constant 0 : index
    %c0_15 = arith.constant 0 : index
    %c0_16 = arith.constant 0 : index
    %8 = vector.load %arg8[%c0_14, %c0_15, %c0_16] : memref<1x12x256xf32, #tpu.memory_space<vmem>>, vector<1x4x256xf32>
    %9 = vector.shape_cast %8 : vector<1x4x256xf32> to vector<4x256xf32>
    %10 = vector.shape_cast %7 : vector<4x256xf32> to vector<1x4x256xf32>
    tpu.vector_store %arg8[%c0_14, %c0_15, %c0_16], %10 {strides = array<i32>} : memref<1x12x256xf32, #tpu.memory_space<vmem>>, vector<1x4x256xf32>,
    %11 = vector.broadcast %0 : vector<4x1xf32> to vector<4x256xf32>
    %12 = arith.mulf %7, %11 : vector<4x256xf32>
    %13 = vector.broadcast %1 : vector<4x1xf32> to vector<4x256xf32>
    %14 = arith.addf %12, %13 : vector<4x256xf32>
    %cst = arith.constant 0.000000e+00 : f32
    %15 = vector.broadcast %cst : f32 to vector<4x256xf32>
    %16 = arith.maximumf %14, %15 : vector<4x256xf32>
    %17 = arith.truncf %16 : vector<4x256xf32> to vector<4x256xbf16>
    %cst_17 = arith.constant dense<0.000000e+00> : vector<32x256xf32>
    %18 = tpu.matmul %3, %17, %cst_17 {dimension_numbers = #tpu.dot_dimension_numbers<[1], [0], [0], [1], [0, 0, 1, 1], [], []>} : vector<32x4xbf16>, vector<4x256xbf16>, vector<32x256xf32> -> vector<32x256xf32>
    %19 = vector.broadcast %2 : vector<32x1xf32> to vector<32x256xf32>
    %20 = arith.addf %18, %19 : vector<32x256xf32>
    %cst_18 = arith.constant 0.000000e+00 : f32
    %21 = vector.broadcast %cst_18 : f32 to vector<32x256xf32>
    %22 = arith.maximumf %20, %21 : vector<32x256xf32>
    %23 = arith.truncf %22 : vector<32x256xf32> to vector<32x256xbf16>
    %cst_19 = arith.constant dense<0.000000e+00> : vector<72x256xf32>
    %24 = tpu.matmul %4, %23, %cst_19 {dimension_numbers = #tpu.dot_dimension_numbers<[1], [0], [0], [1], [0, 0, 1, 1], [], []>} : vector<72x32xbf16>, vector<32x256xbf16>, vector<72x256xf32> -> vector<72x256xf32>
    %25 = vector.extract_strided_slice %24 {offsets = [32, 0], sizes = [8, 256], strides = [1, 1]} : vector<72x256xf32> to vector<8x256xf32>
    %26 = vector.extract_strided_slice %24 {offsets = [0, 0], sizes = [8, 256], strides = [1, 1]} : vector<72x256xf32> to vector<8x256xf32>
    %c17_i32 = arith.constant 17 : i32
    %27 = tpu.dynamic_rotate %26 by %c17_i32 dim 1 : vector<8x256xf32>, i32 -> vector<8x256xf32>
    %28 = vector.extract_strided_slice %5 {offsets = [0, 0], sizes = [1, 256], strides = [1, 1]} : vector<9x256xf32> to vector<1x256xf32>
    %29 = vector.broadcast %28 : vector<1x256xf32> to vector<8x256xf32>
    %30 = arith.mulf %27, %29 : vector<8x256xf32>
    %31 = arith.addf %25, %30 : vector<8x256xf32>
    %32 = vector.extract_strided_slice %24 {offsets = [8, 0], sizes = [8, 256], strides = [1, 1]} : vector<72x256xf32> to vector<8x256xf32>
    %c16_i32 = arith.constant 16 : i32
    %33 = tpu.dynamic_rotate %32 by %c16_i32 dim 1 : vector<8x256xf32>, i32 -> vector<8x256xf32>
    %34 = vector.extract_strided_slice %5 {offsets = [1, 0], sizes = [1, 256], strides = [1, 1]} : vector<9x256xf32> to vector<1x256xf32>
    %35 = vector.broadcast %34 : vector<1x256xf32> to vector<8x256xf32>
    %36 = arith.mulf %33, %35 : vector<8x256xf32>
    %37 = arith.addf %31, %36 : vector<8x256xf32>
    %38 = vector.extract_strided_slice %24 {offsets = [16, 0], sizes = [8, 256], strides = [1, 1]} : vector<72x256xf32> to vector<8x256xf32>
    %c15_i32 = arith.constant 15 : i32
    %39 = tpu.dynamic_rotate %38 by %c15_i32 dim 1 : vector<8x256xf32>, i32 -> vector<8x256xf32>
    %40 = vector.extract_strided_slice %5 {offsets = [2, 0], sizes = [1, 256], strides = [1, 1]} : vector<9x256xf32> to vector<1x256xf32>
    %41 = vector.broadcast %40 : vector<1x256xf32> to vector<8x256xf32>
    %42 = arith.mulf %39, %41 : vector<8x256xf32>
    %43 = arith.addf %37, %42 : vector<8x256xf32>
    %44 = vector.extract_strided_slice %24 {offsets = [24, 0], sizes = [8, 256], strides = [1, 1]} : vector<72x256xf32> to vector<8x256xf32>
    %c1_i32 = arith.constant 1 : i32
    %45 = tpu.dynamic_rotate %44 by %c1_i32 dim 1 : vector<8x256xf32>, i32 -> vector<8x256xf32>
    %46 = vector.extract_strided_slice %5 {offsets = [3, 0], sizes = [1, 256], strides = [1, 1]} : vector<9x256xf32> to vector<1x256xf32>
    %47 = vector.broadcast %46 : vector<1x256xf32> to vector<8x256xf32>
    %48 = arith.mulf %45, %47 : vector<8x256xf32>
    %49 = arith.addf %43, %48 : vector<8x256xf32>
    %50 = vector.extract_strided_slice %24 {offsets = [40, 0], sizes = [8, 256], strides = [1, 1]} : vector<72x256xf32> to vector<8x256xf32>
    %c255_i32 = arith.constant 255 : i32
    %51 = tpu.dynamic_rotate %50 by %c255_i32 dim 1 : vector<8x256xf32>, i32 -> vector<8x256xf32>
    %52 = vector.extract_strided_slice %5 {offsets = [5, 0], sizes = [1, 256], strides = [1, 1]} : vector<9x256xf32> to vector<1x256xf32>
    %53 = vector.broadcast %52 : vector<1x256xf32> to vector<8x256xf32>
    %54 = arith.mulf %51, %53 : vector<8x256xf32>
    %55 = arith.addf %49, %54 : vector<8x256xf32>
    %56 = vector.extract_strided_slice %24 {offsets = [48, 0], sizes = [8, 256], strides = [1, 1]} : vector<72x256xf32> to vector<8x256xf32>
    %c241_i32 = arith.constant 241 : i32
    %57 = tpu.dynamic_rotate %56 by %c241_i32 dim 1 : vector<8x256xf32>, i32 -> vector<8x256xf32>
    %58 = vector.extract_strided_slice %5 {offsets = [6, 0], sizes = [1, 256], strides = [1, 1]} : vector<9x256xf32> to vector<1x256xf32>
    %59 = vector.broadcast %58 : vector<1x256xf32> to vector<8x256xf32>
    %60 = arith.mulf %57, %59 : vector<8x256xf32>
    %61 = arith.addf %55, %60 : vector<8x256xf32>
    %62 = vector.extract_strided_slice %24 {offsets = [56, 0], sizes = [8, 256], strides = [1, 1]} : vector<72x256xf32> to vector<8x256xf32>
    %c240_i32 = arith.constant 240 : i32
    %63 = tpu.dynamic_rotate %62 by %c240_i32 dim 1 : vector<8x256xf32>, i32 -> vector<8x256xf32>
    %64 = vector.extract_strided_slice %5 {offsets = [7, 0], sizes = [1, 256], strides = [1, 1]} : vector<9x256xf32> to vector<1x256xf32>
    %65 = vector.broadcast %64 : vector<1x256xf32> to vector<8x256xf32>
    %66 = arith.mulf %63, %65 : vector<8x256xf32>
    %67 = arith.addf %61, %66 : vector<8x256xf32>
    %68 = vector.extract_strided_slice %24 {offsets = [64, 0], sizes = [8, 256], strides = [1, 1]} : vector<72x256xf32> to vector<8x256xf32>
    %c239_i32 = arith.constant 239 : i32
    %69 = tpu.dynamic_rotate %68 by %c239_i32 dim 1 : vector<8x256xf32>, i32 -> vector<8x256xf32>
    %70 = vector.extract_strided_slice %5 {offsets = [8, 0], sizes = [1, 256], strides = [1, 1]} : vector<9x256xf32> to vector<1x256xf32>
    %71 = vector.broadcast %70 : vector<1x256xf32> to vector<8x256xf32>
    %72 = arith.mulf %69, %71 : vector<8x256xf32>
    %73 = arith.addf %67, %72 : vector<8x256xf32>
    %c0_20 = arith.constant 0 : index
    %c4 = arith.constant 4 : index
    %c0_21 = arith.constant 0 : index
    %74 = vector.load %arg8[%c0_20, %c4, %c0_21] : memref<1x12x256xf32, #tpu.memory_space<vmem>>, vector<1x8x256xf32>
    %75 = vector.shape_cast %74 : vector<1x8x256xf32> to vector<8x256xf32>
    %76 = vector.shape_cast %73 : vector<8x256xf32> to vector<1x8x256xf32>
    tpu.vector_store %arg8[%c0_20, %c4, %c0_21], %76 {strides = array<i32>} : memref<1x12x256xf32, #tpu.memory_space<vmem>>, vector<1x8x256xf32>,
    return
  }
  func.func @transform_0(%arg0: i32) -> (i32, i32, i32) {
    %c0_i32 = arith.constant 0 : i32
    %c0_i32_0 = arith.constant 0 : i32
    %c0_i32_1 = arith.constant 0 : i32
    return %arg0, %c0_i32, %c0_i32_0 : i32, i32, i32
  }
  func.func @transform_1(%arg0: i32) -> (i32, i32) {
    %c0_i32 = arith.constant 0 : i32
    %c0_i32_0 = arith.constant 0 : i32
    %c0_i32_1 = arith.constant 0 : i32
    return %c0_i32, %c0_i32_0 : i32, i32
  }
  func.func @transform_2(%arg0: i32) -> (i32, i32) {
    %c0_i32 = arith.constant 0 : i32
    %c0_i32_0 = arith.constant 0 : i32
    %c0_i32_1 = arith.constant 0 : i32
    return %c0_i32, %c0_i32_0 : i32, i32
  }
  func.func @transform_3(%arg0: i32) -> (i32, i32) {
    %c0_i32 = arith.constant 0 : i32
    %c0_i32_0 = arith.constant 0 : i32
    %c0_i32_1 = arith.constant 0 : i32
    return %c0_i32, %c0_i32_0 : i32, i32
  }
  func.func @transform_4(%arg0: i32) -> (i32, i32) {
    %c0_i32 = arith.constant 0 : i32
    %c0_i32_0 = arith.constant 0 : i32
    %c0_i32_1 = arith.constant 0 : i32
    return %c0_i32, %c0_i32_0 : i32, i32
  }
  func.func @transform_5(%arg0: i32) -> (i32, i32) {
    %c0_i32 = arith.constant 0 : i32
    %c0_i32_0 = arith.constant 0 : i32
    %c0_i32_1 = arith.constant 0 : i32
    return %c0_i32, %c0_i32_0 : i32, i32
  }
  func.func @transform_6(%arg0: i32) -> (i32, i32) {
    %c0_i32 = arith.constant 0 : i32
    %c0_i32_0 = arith.constant 0 : i32
    %c0_i32_1 = arith.constant 0 : i32
    return %c0_i32, %c0_i32_0 : i32, i32
  }
  func.func @transform_7(%arg0: i32) -> (i32, i32, i32) {
    %c0_i32 = arith.constant 0 : i32
    %c0_i32_0 = arith.constant 0 : i32
    %c0_i32_1 = arith.constant 0 : i32
    return %arg0, %c0_i32, %c0_i32_0 : i32, i32, i32
  }
}

</mosaic_0001>

<bundles_post_ra>
// kernel: tpu_custom_call.1
= control target key start
LH: loop header
LB: loop body
LE: loop exit
PB: predicated region body
PF: predicated region fallthrough
CT: control target
= control target key end

     0   :  { %s909_s24 = smov 0   ;;  %s1032_s0 = inlined_call_operand.vmem [shape: f32[2,4,256], index: 0, kind: input, shape index: {}]   ;;  %s1033_s1 = inlined_call_operand.vmem [shape: f32[4,1], index: 1, kind: input, shape index: {}]   ;;  %s1034_s2 = inlined_call_operand.vmem [shape: f32[4,1], index: 2, kind: input, shape index: {}]   ;;  %s1035_s3 = inlined_call_operand.vmem [shape: bf16[32,4], index: 3, kind: input, shape index: {}]   ;;  %s1036_s4 = inlined_call_operand.vmem [shape: f32[32,1], index: 4, kind: input, shape index: {}]   ;;  %s1037_s5 = inlined_call_operand.vmem [shape: bf16[72,32], index: 5, kind: input, shape index: {}]   ;;  %s1038_s6 = inlined_call_operand.vmem [shape: f32[9,256], index: 6, kind: input, shape index: {}]   ;;  %s1039_s7 = inlined_call_operand.vmem [shape: f32[2,12,256], index: 7, kind: output, shape index: {}]  }
   0x1 LB: > { %s789_s25 = sadd.s32 4294967295, %s857_s24   ;;  %p793_p0 = scmp.ge.s32.totalorder %s857_s24, 1  ;;  %s857_s24 = sphi %s909_s24, %s17_s24  }
   0x2   : > { %p237_p1 = scmp.lt.s32.totalorder %s857_s24, 3 }
   0x4   : > { %p238_p2 = pnand %p793_p0, %p237_p1 }
   0x5   : > { %v280_v0 = vld [vmem:[%s1033_s1] sm:$0xf] (!%p238_p2)  ;;  %v859_v1 = vmov (!%p238_p2), 0   ;;  %p269_p3 = scmp.lt.s32.totalorder (!%p238_p2), %s789_s25, 1  ;;  %v284_v3 = vld [vmem:[%s1036_s4 + $0x10] sm:$0xff] (!%p238_p2)  ;;  %v283_v7 = vld [vmem:[%s1036_s4 + $0x8] sm:$0xff] (!%p238_p2)  ;;  %v316_v11 = vlaneseq (!%p238_p2) }
   0x6   : > { %241 = sbr.rel (%p238_p2) target bundleno = 750 (0x2ee), region = 48  ;;  %841 = vset.pattern.permute.xlu0 (!%p238_p2), %v859_v1  ;;  %417 = vmatprep.mubr.bf16.mxu0 (!%p238_p2), %v859_v1  ;;  %v281_v2 = vld [vmem:[%s1034_s2] sm:$0xf] (!%p238_p2)  ;;  %v285_v8 = vld [vmem:[%s1036_s4 + $0x18] sm:$0xff] (!%p238_p2)  ;;  %v860_v9 = vmov (!%p238_p2), 839922192  }
   0x7   : > { %311 = vperm.xlu0 (!%p238_p2), %841, %v280_v0   ;;  %842 = vset.pattern.permute.xlu1 (!%p238_p2), %v859_v1  ;;  %v282_v6 = vld [vmem:[%s1036_s4] sm:$0xff] (!%p238_p2)  ;;  %v314_v10 = vunpack.c.l.s4 (!%p238_p2), %v860_v9  ;;  %v950_v13 = vshrl.u32 (!%p238_p2), %v316_v11, 7  ;;  %vm378_vm0 = vcmask (!%p238_p2), 1041408   ;;  %vm371_vm1 = vcmask (!%p238_p2), 31744   ;;  %v845_v27 = vld [vmem:[%s1035_s3 + $0x8] sm:$0xff] (!%p238_p2)   ;;  %v848_v62 = vld [vmem:[%s1037_s5 + $0x10] sm:$0xff] (!%p238_p2)  }
   0x8   : > { %531 = vmatprep.mubr.bf16.mxu1 (!%p238_p2), %v859_v1  ;;  %343 = vperm.xlu1 (!%p238_p2), %842, %v282_v6   ;;  %v844_v26 = vld [vmem:[%s1035_s3] sm:$0xff] (!%p238_p2)   ;;  %v847_v61 = vld [vmem:[%s1037_s5 + $0x8] sm:$0xff] (!%p238_p2)   ;;  %vm473_vm2 = vcmask (!%p238_p2), 261120   ;;  %v849_v63 = vld [vmem:[%s1037_s5 + $0x18] sm:$0xff] (!%p238_p2)   ;;  %s861_s16 = smov (!%p238_p2), 17   ;;  %s862_s17 = smov (!%p238_p2), 15  }
   0x9   : > { %v315_v12 = vunpack.c.0.s8 (!%p238_p2), %v314_v10  ;;  %v846_v60 = vld [vmem:[%s1037_s5] sm:$0xff] (!%p238_p2)   ;;  %s863_s18 = smov (!%p238_p2), 16   ;;  %s864_s19 = smov (!%p238_p2), 1  }
   0xa   : > { %v850_v0 = vld [vmem:[%s1037_s5 + $0x20] ss:$0 sps:$4 sm:$0xff] (!%p238_p2)   ;;  %s865_s20 = smov (!%p238_p2), 127   ;;  %s866_s21 = smov (!%p238_p2), 113  }
   0xb   : > { %324 = vperm.xlu0 (!%p238_p2), %841, %v281_v2   ;;  %v318_v14 = vsub.s32 (!%p238_p2), %v315_v12, %v950_v13  ;;  %s867_s22 = smov (!%p238_p2), 112   ;;  %s868_s23 = smov (!%p238_p2), 111  }
   0xc   : > { %348 = vperm.xlu1 (!%p238_p2), %842, %v283_v7  }
   0xd   : > { %s1041_s25 = smov (!%p269_p3, %s789_s25), 1 }
   0xe   : > { %s817_s30 = sshll.u32 %s1041_s25, 3  ;;  %s818_s8 = sshll.u32 %s1041_s25, 5 }
   0xf   : > { %s273_s11 = scalar_lea.vmem %s1032_s0, %s817_s30  ;;  %s933_s14 = scalar_lea.vmem %s1039_s7, %s818_s8  ;;  %353 = vperm.xlu0 %841, %v284_v3  }
  0x10   : > { %v303_v4 = vld [vmem:[%s273_s11] sm:$0xff]  ;;  %358 = vperm.xlu1 %842, %v285_v8  }
  0x11   : > { %v305_v5 = vcombine.high %v303_v4, %v303_v4  ;;  %307 = vst [vmem:[%s933_s14] sm:$0xf] %v303_v4 }
  0x13   : > { %308 = vst [vmem:[%s933_s14 + $0x8] sm:$0xf] %v305_v5 }
  0x86   : > { %v312_v15 = vpop.permute.xlu0 %311 }
  0x87   : > { %v319_v16 = vrot.slane %v312_v15, %v318_v14  ;;  %v344_v28 = vpop.permute.xlu1 %343 }
  0x89   : > { %v321_v18 = vmul.f32 %v319_v16, %v303_v4 }
  0x8a   : > { %v325_v17 = vpop.permute.xlu0 %324 }
  0x8b   : > { %v332_v19 = vrot.slane %v325_v17, %v318_v14  ;;  %v349_v32 = vpop.permute.xlu1 %348 }
  0x8d   : > { %v334_v20 = vadd.f32 %v332_v19, %v321_v18 }
  0x8e   : > { %v354_v43 = vpop.permute.xlu0 %353 }
  0x8f   : > { %v335_v21 = vmax.f32 %v334_v20, 0.0  ;;  %v359_v48 = vpop.permute.xlu1 %358 }
  0x91   : > { %v337_v22 = vcombine.high %v335_v21, %v335_v21  ;;  %v339_v23 = vpack.c.bf16 %v335_v21, %v335_v21 }
  0x93   : > { %v340_v24 = vpack.c.bf16 %v337_v22, %v337_v22  ;;  %v380_v25 = vsel %vm378_vm0, %v339_v23, 0 }
  0x95   : > { %800 = vmatprep.subr.msk.bf16.mxu0 %vm378_vm0, %v340_v24  ;;  %v980_v24 = vand.u32 127, %v316_v11  ;;  %v600_v11 = vsub.s32 1, %v950_v13 }
  0x96   : > { %386 = vmatpush1.bf16.msra.mxu0 %v380_v25 }
  0x97   : > { %vm576_vm3 = vcmp.lt.s32.totalorder %v980_v24, 17  ;;  %vm595_vm4 = vcmp.lt.s32.totalorder %v980_v24, 16  ;;  %vm614_vm5 = vcmp.lt.s32.totalorder %v980_v24, 15  ;;  %vm633_vm6 = vcmp.lt.s32.totalorder %v980_v24, 1 }
  0x98   : > { %vm652_vm7 = vcmp.lt.s32.totalorder %v980_v24, 127  ;;  %vm671_vm8 = vcmp.lt.s32.totalorder %v980_v24, 113  ;;  %vm690_vm9 = vcmp.lt.s32.totalorder %v980_v24, 112  ;;  %vm709_vm10 = vcmp.lt.s32.totalorder %v980_v24, 111 }
  0x99   : > { %801 = vmatmul.mubr.msk.bf16.vlgmr.msra.gmra.mrb[0].mxu0 %vm371_vm1, %v844_v26  ;;  %v581_v26 = vsub.s32 0, %v950_v13 }
  0x9a   : > { %427 = vmatprep.mubr.bf16.mxu0 %v859_v1 }
  0xa1   : > { %802 = vmatmul.mubr.msk.bf16.gmra.mrb[4].mxu0 %vm371_vm1, %v845_v27  ;;  %v986_v27 = vld [vmem:[%s1038_s6] sm:$0xff] }
  0xa2   : > { %521 = vmatprep.mubr.bf16.mxu0 %v859_v1 }
 0x16c   : > { %v419_v29 = vpop.f32.mrb[0].mxu0 }
 0x16d   : > { %v420_v30 = vadd.f32 %v419_v29, %v344_v28  ;;  %v421_v31 = vpop.f32.mrb[1].mxu0 }
 0x16e   : > { %v422_v33 = vadd.f32 %v421_v31, %v344_v28  ;;  %v423_v34 = vpop.f32.mrb[2].mxu0  ;;  %v991_v28 = vld [vmem:[%s1038_s6 + $0x8] sm:$0xff]  ;;  %v582_v31 = vrot.slane %v986_v27, %v581_v26 }
 0x16f   : > { %v424_v35 = vadd.f32 %v423_v34, %v349_v32  ;;  %v425_v36 = vpop.f32.mrb[3].mxu0  ;;  %v438_v38 = vmax.f32 %v420_v30, 0.0 }
 0x170   : > { %v426_v37 = vadd.f32 %v425_v36, %v349_v32  ;;  %v439_v40 = vmax.f32 %v422_v33, 0.0  ;;  %v586_v32 = vrot.slane %v991_v28, %v581_v26  ;;  %v601_v36 = vrot.slane %v986_v27, %v600_v11 }
 0x171   : > { %v440_v39 = vmax.f32 %v424_v35, 0.0 }
 0x172   : > { %v441_v41 = vmax.f32 %v426_v37, 0.0  ;;  %v605_v37 = vrot.slane %v991_v28, %v600_v11 }
 0x173   : > { %v446_v42 = vpack.c.bf16 %v440_v39, %v438_v38  ;;  %v619_v39 = vsub.s32 2, %v950_v13 }
 0x174   : > { %v447_v44 = vpack.c.bf16 %v441_v41, %v439_v40  ;;  %v429_v45 = vpop.f32.mrb[4].mxu0 }
 0x175   : > { %v430_v46 = vadd.f32 %v429_v45, %v354_v43  ;;  %v431_v47 = vpop.f32.mrb[5].mxu0  ;;  %v638_v45 = vsub.s32 3, %v950_v13 }
 0x176   : > { %v432_v49 = vadd.f32 %v431_v47, %v354_v43  ;;  %v433_v50 = vpop.f32.mrb[6].mxu0  ;;  %489 = vmatprep.subr.bf16.mxu0 %v447_v44  ;;  %819 = vmatprep.subr.bf16.mxu1 %v447_v44 }
 0x177   : > { %v434_v51 = vadd.f32 %v433_v50, %v359_v48  ;;  %v435_v52 = vpop.f32.mrb[7].mxu0  ;;  %490 = vmatpush1.bf16.msra.mxu0 %v446_v42  ;;  %821 = vmatpush1.bf16.msra.mxu1 %v446_v42  ;;  %v442_v54 = vmax.f32 %v430_v46, 0.0  ;;  %v657_v50 = vsub.s32 5, %v950_v13 }
 0x178   : > { %v436_v53 = vadd.f32 %v435_v52, %v359_v48  ;;  %v443_v56 = vmax.f32 %v432_v49, 0.0  ;;  %v620_v49 = vrot.slane %v986_v27, %v619_v39 }
 0x179   : > { %v444_v55 = vmax.f32 %v434_v51, 0.0 }
 0x17a   : > { %v445_v57 = vmax.f32 %v436_v53, 0.0  ;;  %v624_v53 = vrot.slane %v991_v28, %v619_v39 }
 0x17b   : > { %v448_v58 = vpack.c.bf16 %v444_v55, %v442_v54 }
 0x17c   : > { %v449_v59 = vpack.c.bf16 %v445_v57, %v443_v56  ;;  %v639_v56 = vrot.slane %v986_v27, %v638_v45 }
 0x17e   : > { %491 = vmatprep.subr.bf16.mxu0 %v449_v59  ;;  %820 = vmatprep.subr.bf16.mxu1 %v449_v59 }
 0x17f   : > { %492 = vmatpush1.bf16.msra.mxu0 %v448_v58  ;;  %822 = vmatpush1.bf16.msra.mxu1 %v448_v58  ;;  %v676_v58 = vsub.s32 6, %v950_v13 }
 0x182   : > { %808 = vmatmul.mubr.msk.bf16.vlgmr.msra.gmra.mrb[8].mxu0 %vm473_vm2, %v846_v60  ;;  %809 = vmatmul.mubr.msk.bf16.vlgmr.msra.gmra.mrb[0].mxu1 %vm473_vm2, %v847_v61  ;;  %v643_v61 = vrot.slane %v991_v28, %v638_v45 }
 0x183   : > { %541 = vmatprep.mubr.bf16.mxu1 %v859_v1 }
 0x18a   : > { %810 = vmatmul.mubr.msk.bf16.gmra.mrb[4].mxu1 %vm473_vm2, %v848_v62 }
 0x18b   : > { %551 = vmatprep.mubr.bf16.mxu1 %v859_v1 }
 0x192   : > { %811 = vmatmul.mubr.msk.bf16.gmra.mrb[8].mxu1 %vm473_vm2, %v849_v63 }
 0x193   : > { %561 = vmatprep.mubr.bf16.mxu1 %v859_v1 }
 0x19a   : > { %812 = vmatmul.mubr.msk.bf16.gmra.mrb[12].mxu1 %vm473_vm2, %v850_v0 }
 0x255   : > { %v523_v2 = vpop.f32.mrb[8].mxu0  ;;  %v533_v3 = vpop.f32.mrb[0].mxu1 }
 0x256   : > { %570 = vrot.lane.b32.xlu0 %v523_v2, %s861_s16  ;;  %v525_v4 = vpop.f32.mrb[9].mxu0  ;;  %v535_v5 = vpop.f32.mrb[1].mxu1  ;;  %v658_v2 = vrot.slane %v986_v27, %v657_v50 }
 0x257   : > { %572 = vrot.lane.b32.xlu1 %v525_v4, %s861_s16  ;;  %v527_v6 = vpop.f32.mrb[10].mxu0  ;;  %v537_v7 = vpop.f32.mrb[2].mxu1 }
 0x258   : > { %v529_v8 = vpop.f32.mrb[11].mxu0  ;;  %v539_v9 = vpop.f32.mrb[3].mxu1 }
 0x25a   : > { %610 = vrot.lane.b32.xlu0 %v533_v3, %s862_s17  ;;  %v662_v3 = vrot.slane %v991_v28, %v657_v50 }
 0x25b   : > { %612 = vrot.lane.b32.xlu1 %v535_v5, %s862_s17 }
 0x25d   : > { %v543_v1 = vpop.f32.mrb[4].mxu1 }
 0x25e   : > { %591 = vrot.lane.b32.xlu0 %v527_v6, %s863_s18  ;;  %v545_v10 = vpop.f32.mrb[5].mxu1  ;;  %v695_v6 = vsub.s32 7, %v950_v13 }
 0x25f   : > { %593 = vrot.lane.b32.xlu1 %v529_v8, %s863_s18  ;;  %v547_v12 = vpop.f32.mrb[6].mxu1 }
 0x260   : > { %v549_v14 = vpop.f32.mrb[7].mxu1  ;;  %v696_v13 = vrot.slane %v986_v27, %v695_v6 }
 0x262   : > { %629 = vrot.lane.b32.xlu0 %v537_v7, %s864_s19 }
 0x263   : > { %631 = vrot.lane.b32.xlu1 %v539_v9, %s864_s19 }
 0x265   : > { %v553_v15 = vpop.f32.mrb[8].mxu1 }
 0x266   : > { %648 = vrot.lane.b32.xlu0 %v547_v12, %s865_s20  ;;  %v555_v16 = vpop.f32.mrb[9].mxu1 }
 0x267   : > { %650 = vrot.lane.b32.xlu1 %v549_v14, %s865_s20  ;;  %v557_v17 = vpop.f32.mrb[10].mxu1 }
 0x268   : > { %v559_v18 = vpop.f32.mrb[11].mxu1 }
 0x26a   : > { %667 = vrot.lane.b32.xlu0 %v553_v15, %s866_s21 }
 0x26b   : > { %669 = vrot.lane.b32.xlu1 %v555_v16, %s866_s21 }
 0x26d   : > { %v563_v19 = vpop.f32.mrb[12].mxu1 }
 0x26e   : > { %686 = vrot.lane.b32.xlu0 %v557_v17, %s867_s22  ;;  %v565_v20 = vpop.f32.mrb[13].mxu1 }
 0x26f   : > { %688 = vrot.lane.b32.xlu1 %v559_v18, %s867_s22  ;;  %v567_v21 = vpop.f32.mrb[14].mxu1 }
 0x270   : > { %v568_v22 = vpop.f32.mrb[15].mxu1 }
 0x271   : > { %v700_v22 = vrot.slane %v991_v28, %v695_v6 }
 0x272   : > { %705 = vrot.lane.b32.xlu0 %v563_v19, %s868_s23 }
 0x273   : > { %707 = vrot.lane.b32.xlu1 %v565_v20, %s868_s23 }
 0x2c8   : > { %v571_v23 = vpop.permute.xlu0 %570 }
 0x2c9   : > { %v573_v25 = vpop.permute.xlu1 %572 }
 0x2ca   : > { %v577_v33 = vsel %vm576_vm3, %v571_v23, %v573_v25  ;;  %v578_v34 = vsel %vm576_vm3, %v573_v25, %v571_v23 }
 0x2cb   : > { %v587_v42 = vmul.f32 %v582_v31, %v578_v34  ;;  %v588_v43 = vmul.f32 %v586_v32, %v577_v33 }
 0x2cc   : > { %v611_v29 = vpop.permute.xlu0 %610 }
 0x2cd   : > { %v613_v30 = vpop.permute.xlu1 %612  ;;  %v589_v51 = vadd.f32 %v587_v42, %v543_v1  ;;  %v590_v52 = vadd.f32 %v588_v43, %v545_v10  ;;  %v677_v1 = vrot.slane %v986_v27, %v676_v58  ;;  %v681_v10 = vrot.slane %v991_v28, %v676_v58  ;;  %v813_v27 = vld [vmem:[%s1038_s6 + $0x10] ss:$0 sm:$0xff]  ;;  %v814_v28 = vld [vmem:[%s1038_s6 + $0x18] ss:$0 sm:$0xff] }
 0x2ce   : > { %v615_v54 = vsel %vm614_vm5, %v611_v29, %v613_v30  ;;  %v616_v55 = vsel %vm614_vm5, %v613_v30, %v611_v29 }
 0x2cf   : > { %v625_v4 = vmul.f32 %v620_v49, %v616_v55  ;;  %v626_v5 = vmul.f32 %v624_v53, %v615_v54 }
 0x2d0   : > { %v592_v35 = vpop.permute.xlu0 %591 }
 0x2d1   : > { %v594_v38 = vpop.permute.xlu1 %593 }
 0x2d2   : > { %v596_v40 = vsel %vm595_vm4, %v592_v35, %v594_v38  ;;  %v597_v41 = vsel %vm595_vm4, %v594_v38, %v592_v35 }
 0x2d3   : > { %v606_v46 = vmul.f32 %v601_v36, %v597_v41  ;;  %v607_v47 = vmul.f32 %v605_v37, %v596_v40 }
 0x2d4   : > { %v630_v44 = vpop.permute.xlu0 %629 }
 0x2d5   : > { %v632_v48 = vpop.permute.xlu1 %631  ;;  %v608_v59 = vadd.f32 %v606_v46, %v589_v51  ;;  %v609_v60 = vadd.f32 %v607_v47, %v590_v52 }
 0x2d6   : > { %v634_v63 = vsel %vm633_vm6, %v630_v44, %v632_v48  ;;  %v635_v0 = vsel %vm633_vm6, %v632_v48, %v630_v44 }
 0x2d7   : > { %v627_v12 = vadd.f32 %v625_v4, %v608_v59  ;;  %v628_v14 = vadd.f32 %v626_v5, %v609_v60  ;;  %v644_v15 = vmul.f32 %v639_v56, %v635_v0  ;;  %v645_v16 = vmul.f32 %v643_v61, %v634_v63 }
 0x2d8   : > { %v649_v57 = vpop.permute.xlu0 %648 }
 0x2d9   : > { %v651_v62 = vpop.permute.xlu1 %650  ;;  %v646_v25 = vadd.f32 %v644_v15, %v627_v12  ;;  %v647_v26 = vadd.f32 %v645_v16, %v628_v14 }
 0x2da   : > { %v653_v7 = vsel %vm652_vm7, %v649_v57, %v651_v62  ;;  %v654_v8 = vsel %vm652_vm7, %v651_v62, %v649_v57 }
 0x2db   : > { %v663_v20 = vmul.f32 %v658_v2, %v653_v7  ;;  %v664_v21 = vmul.f32 %v662_v3, %v654_v8 }
 0x2dc   : > { %v668_v9 = vpop.permute.xlu0 %667 }
 0x2dd   : > { %v670_v17 = vpop.permute.xlu1 %669  ;;  %v665_v33 = vadd.f32 %v663_v20, %v646_v25  ;;  %v666_v34 = vadd.f32 %v664_v21, %v647_v26 }
 0x2de   : > { %v672_v18 = vsel %vm671_vm8, %v668_v9, %v670_v17  ;;  %v673_v19 = vsel %vm671_vm8, %v670_v17, %v668_v9 }
 0x2df   : > { %v682_v29 = vmul.f32 %v677_v1, %v672_v18  ;;  %v683_v30 = vmul.f32 %v681_v10, %v673_v19 }
 0x2e0   : > { %v687_v23 = vpop.permute.xlu0 %686 }
 0x2e1   : > { %v689_v11 = vpop.permute.xlu1 %688  ;;  %v684_v38 = vadd.f32 %v682_v29, %v665_v33  ;;  %v685_v39 = vadd.f32 %v683_v30, %v666_v34 }
 0x2e2   : > { %v691_v31 = vsel %vm690_vm9, %v687_v23, %v689_v11  ;;  %v692_v32 = vsel %vm690_vm9, %v689_v11, %v687_v23 }
 0x2e3   : > { %v701_v35 = vmul.f32 %v696_v13, %v691_v31  ;;  %v702_v36 = vmul.f32 %v700_v22, %v692_v32 }
 0x2e4   : > { %v706_v37 = vpop.permute.xlu0 %705 }
 0x2e5   : > { %v708_v40 = vpop.permute.xlu1 %707  ;;  %v703_v42 = vadd.f32 %v701_v35, %v684_v38  ;;  %v704_v43 = vadd.f32 %v702_v36, %v685_v39 }
 0x2e6   : > { %v710_v41 = vsel %vm709_vm10, %v706_v37, %v708_v40  ;;  %v711_v24 = vsel %vm709_vm10, %v708_v40, %v706_v37 }
 0x2e7   : > { %v720_v44 = vmul.f32 %v813_v27, %v710_v41  ;;  %v721_v45 = vmul.f32 %v814_v28, %v711_v24 }
 0x2e9   : > { %v722_v46 = vadd.f32 %v720_v44, %v703_v42  ;;  %v723_v47 = vadd.f32 %v721_v45, %v704_v43 }
 0x2eb   : > { %v726_v48 = vrot.slane %v722_v46, 4  ;;  %v727_v49 = vrot.slane %v723_v47, 4 }
 0x2ed   : > { %730 = vst [vmem:[%s933_s14 + $0x10] ss:$-12 sps:$4 sm:$0xff] %v726_v48   ;;  %731 = vst [vmem:[%s933_s14 + $0x18] ss:$-12 sps:$4 sm:$0xff] %v727_v49  }
 0x2ee PF: > { %s17_s24 = sadd.s32 1, %s857_s24  }
 0x2ef   : > { %p14_p4 = scmp.ge.s32.totalorder %s17_s24, 4  }
 0x2f1   :  { %16 = sbr.rel (!%p14_p4) target bundleno = 1 (0x1), region = 78 }

</bundles_post_ra>
